<compile_context>
chip_gen: v7x
topology: tpu7x:2x2x1
jax: 0.10.0
libtpu: 0.0.40
codegen_flags: <defaults>
</compile_context>

<pallas_src>
import functools

import numpy as np
import jax
import jax.numpy as jnp
from jax.experimental import pallas as pl
from jax.experimental.pallas import tpu as pltpu


def _round_up(x, m):
    return ((x + m - 1) // m) * m


def _im2ht_kernel(sj_ref, skt_ref, svt_ref, sflag_ref, x_ref, v_ref, o_ref):
    """One grid step = one (row-tile i, vote-step t) pair.

    sflag[t]: 0 = dummy step for an empty HT-column tile (zero-init only),
              1 = first vote tile of this column tile (zero-init + accumulate),
              2 = subsequent vote tile of this column tile (accumulate only).
    """
    t = pl.program_id(1)
    flag = sflag_ref[t]

    @pl.when(flag <= 1)
    def _init():
        o_ref[...] = jnp.zeros_like(o_ref)

    @pl.when(flag >= 1)
    def _acc():
        o_ref[...] += jnp.dot(
            x_ref[...], v_ref[0], preferred_element_type=jnp.float32
        )


def prepare_vote_tiles(vote_mapping, im_size, ht_size, *, tk=256, tn=256,
                       dtype=jnp.bfloat16):
    """One-time (host-side) preprocessing of the static vote_mapping buffer.

    Builds a block-sparse representation of the (im_pix x ht_pix) voting
    matrix: only tiles containing at least one vote are stored, plus the
    flattened per-step scalar-prefetch tables that drive the data-dependent
    tile indexing.  The dense matrix is never materialized.
    """
    vm = np.asarray(vote_mapping)
    im_h, im_w = im_size
    ht_h, ht_w = ht_size
    K = im_h * im_w                 # image pixels (contraction axis)
    N = ht_h * ht_w                 # HT pixels   (output axis)
    Kp = _round_up(K, tk)
    Np = _round_up(N, tn)
    nK, nJ = Kp // tk, Np // tn

    if vm.size == 0:
        im_idx = np.zeros((0,), np.int64)
        ht_idx = np.zeros((0,), np.int64)
        w = np.zeros((0,), np.float32)
    else:
        im_idx = vm[:, 0].astype(np.int64)
        ht_idx = vm[:, 1].astype(np.int64)
        w = vm[:, 2].astype(np.float32)

    # Group votes by (HT-column tile, image-row tile); j-major so that steps
    # for one output column tile are contiguous.
    kt = im_idx // tk
    jt = ht_idx // tn
    tile_key = jt * nK + kt
    order = np.argsort(tile_key, kind="stable")
    key_sorted = tile_key[order]
    uniq, starts = np.unique(key_sorted, return_index=True)
    ends = np.append(starts[1:], key_sorted.size)

    v_tiles = []                    # stacked non-empty (tk, tn) vote tiles
    sj, skt, svt, sflag = [], [], [], []
    ptr = 0
    for j in range(nJ):
        first = True
        while ptr < uniq.size and uniq[ptr] < (j + 1) * nK:
            kk = int(uniq[ptr] - j * nK)
            sel = order[starts[ptr]:ends[ptr]]
            tile = np.zeros((tk, tn), np.float32)
            # Duplicate votes accumulate -> identical to CUDA atomicAdd.
            np.add.at(tile, (im_idx[sel] - kk * tk, ht_idx[sel] - j * tn),
                      w[sel])
            sj.append(j)
            skt.append(kk)
            svt.append(len(v_tiles))
            sflag.append(1 if first else 2)
            v_tiles.append(tile)
            first = False
            ptr += 1
        if first:
            # Empty HT-column tile: one init-only dummy step (no matmul).
            sj.append(j); skt.append(0); svt.append(0); sflag.append(0)
    if not v_tiles:
        v_tiles.append(np.zeros((tk, tn), np.float32))

    v_tiles = np.stack(v_tiles, axis=0)        # (T_tiles, tk, tn)

    return {
        "v_tiles": jnp.asarray(v_tiles, dtype=dtype),
        "sj": jnp.asarray(np.asarray(sj, np.int32)),
        "skt": jnp.asarray(np.asarray(skt, np.int32)),
        "svt": jnp.asarray(np.asarray(svt, np.int32)),
        "sflag": jnp.asarray(np.asarray(sflag, np.int32)),
        "num_steps": len(sj),
        "tk": tk, "tn": tn, "Kp": Kp, "Np": Np, "K": K, "N": N,
        "im_size": (im_h, im_w), "ht_size": (ht_h, ht_w),
        "dtype": dtype,
    }


def im2ht_apply(input_image, prep):
    """JAX/Pallas equivalent of IM2HT.forward, given prepared vote tiles.

    input_image : (N, C, H, W) float
    returns     : (N, C, ht_h, ht_w) float32
    """
    Nb, C, H, W = input_image.shape
    im_h, im_w = prep["im_size"]
    ht_h, ht_w = prep["ht_size"]
    # TODO(synk): adjust_input_dimensions (F.interpolate / F.pad on spatial
    # size mismatch) is not implemented; matching spatial size required.
    assert (H, W) == (im_h, im_w), "input spatial size must equal im_size"

    tk, tn = prep["tk"], prep["tn"]
    Kp, Np = prep["Kp"], prep["Np"]
    K, N = prep["K"], prep["N"]
    T = prep["num_steps"]
    dtype = prep["dtype"]

    M = Nb * C
    # bf16 operands -> pad the M (sublane) axis to a multiple of 16.
    tm = 256 if M >= 256 else _round_up(M, 16)
    Mp = _round_up(M, tm)
    nM = Mp // tm

    x_flat = input_image.reshape(M, H * W).astype(dtype)
    x_pad = jnp.pad(x_flat, ((0, Mp - M), (0, Kp - K)))

    def x_map(i, t, sj, skt, svt, sflag):
        return (i, skt[t])

    def v_map(i, t, sj, skt, svt, sflag):
        return (svt[t], 0, 0)

    def o_map(i, t, sj, skt, svt, sflag):
        return (i, sj[t])

    ib = jnp.dtype(dtype).itemsize
    need = 2 * (tm * tk + tk * tn) * ib + 2 * tm * tn * 4
    vmem_limit = int(min(max(4 * need, 32 * 1024 * 1024), 48 * 1024 * 1024))

    out = pl.pallas_call(
        _im2ht_kernel,
        out_shape=jax.ShapeDtypeStruct((Mp, Np), jnp.float32),
        grid_spec=pltpu.PrefetchScalarGridSpec(
            num_scalar_prefetch=4,
            grid=(nM, T),
            in_specs=[
                pl.BlockSpec((tm, tk), x_map),
                pl.BlockSpec((1, tk, tn), v_map),
            ],
            out_specs=pl.BlockSpec((tm, tn), o_map),
        ),
        compiler_params=pltpu.CompilerParams(
            dimension_semantics=("parallel", "arbitrary"),
            vmem_limit_bytes=vmem_limit,
        ),
    )(prep["sj"], prep["skt"], prep["svt"], prep["sflag"], x_pad,
      prep["v_tiles"])

    return out[:M, :N].reshape(Nb, C, ht_h, ht_w)


def im2ht(input_image, vote_mapping, im_size, ht_size, *, tk=256, tn=256):
    """Convenience wrapper: prepare (once per call here) + apply."""
    prep = prepare_vote_tiles(vote_mapping, im_size, ht_size, tk=tk, tn=tn)
    return im2ht_apply(input_image, prep)


# ----------------------------------------------------------------------------
# Self test
# ----------------------------------------------------------------------------
def _check(x, im_idx, ht_idx, w, im_hw, ht_hw, tk, tn):
    vote_mapping = jnp.stack(
        [im_idx.astype(jnp.float32), ht_idx.astype(jnp.float32), w], axis=1
    )
    prep = prepare_vote_tiles(vote_mapping, im_hw, ht_hw, tk=tk, tn=tn)
    fwd = jax.jit(functools.partial(im2ht_apply, prep=prep))
    out = jax.block_until_ready(fwd(x))

    B, C = x.shape[:2]
    ht_h, ht_w = ht_hw
    dense = (
        jnp.zeros((im_hw[0] * im_hw[1], ht_h * ht_w), jnp.float32)
        .at[im_idx, ht_idx]
        .add(w)
    )
    x_flat = x.reshape(B * C, -1)
    hi = jax.lax.Precision.HIGHEST
    ref_f32 = jnp.matmul(x_flat, dense, precision=hi).reshape(B, C, ht_h, ht_w)
    ref_bf16 = jnp.matmul(
        x_flat.astype(jnp.bfloat16).astype(jnp.float32),
        dense.astype(jnp.bfloat16).astype(jnp.float32),
        precision=hi,
    ).reshape(B, C, ht_h, ht_w)

    assert out.shape == (B, C, ht_h, ht_w)
    # Tight check: same bf16-rounded operands, f32 accumulation.
    assert jnp.allclose(out, ref_bf16, atol=5e-3, rtol=5e-3)
    # Loose check against the exact-f32 CUDA-op semantics (bf16 operand noise).
    assert jnp.allclose(out, ref_f32, atol=5e-2, rtol=5e-2)
    return out


if __name__ == "__main__":
    key = jax.random.PRNGKey(0)
    k1, k2 = jax.random.split(key)

    # Case 1: small shapes, default 256x256 tiles (single vote tile).
    B, C = 2, 4
    im_hw, ht_hw = (16, 16), (8, 16)
    k_x, k_im, k_ht, k_w = jax.random.split(k1, 4)
    x1 = jax.random.normal(k_x, (B, C) + im_hw, dtype=jnp.float32)
    im_idx1 = jax.random.randint(k_im, (512,), 0, im_hw[0] * im_hw[1])
    ht_idx1 = jax.random.randint(k_ht, (512,), 0, ht_hw[0] * ht_hw[1])
    w1 = jax.random.uniform(k_w, (512,), dtype=jnp.float32)
    _check(x1, im_idx1, ht_idx1, w1, im_hw, ht_hw, 256, 256)

    # Case 2: 128x128 tiles with structured sparsity so that HT-column tiles
    # have different numbers of contributing image tiles, and one HT-column
    # tile receives NO votes at all (exercises the flattened step list, the
    # per-step flag dispatch, and the dummy zero-init step).
    im_hw2, ht_hw2 = (32, 32), (16, 24)    # K=1024 (8 k-tiles), N=384 (3 cols)
    k_x, ka1, ka2, ka3, kb1, kb2, kb3 = jax.random.split(k2, 7)
    x2 = jax.random.normal(k_x, (B, C) + im_hw2, dtype=jnp.float32)
    # group A: votes from image pixels [0, 512) into HT pixels [0, 128)
    ia = jax.random.randint(ka1, (1024,), 0, 512)
    ha = jax.random.randint(ka2, (1024,), 0, 128)
    wa = jax.random.uniform(ka3, (1024,), dtype=jnp.float32)
    # group B: votes from image pixels [0, 128) into HT pixels [128, 256)
    ib = jax.random.randint(kb1, (256,), 0, 128)
    hb = jax.random.randint(kb2, (256,), 128, 256)
    wb = jax.random.uniform(kb3, (256,), dtype=jnp.float32)
    # HT pixels [256, 384) receive no votes -> empty column tile -> must be 0.
    im_idx2 = jnp.concatenate([ia, ib])
    ht_idx2 = jnp.concatenate([ha, hb])
    w2 = jnp.concatenate([wa, wb])
    out2 = _check(x2, im_idx2, ht_idx2, w2, im_hw2, ht_hw2, 128, 128)
    assert jnp.all(out2.reshape(B, C, -1)[:, :, 256:] == 0.0)

    print("KERNEL_OK")
</pallas_src>

<mosaic_0001>
module attributes {stable_mosaic.version = 11 : i64} {
  func.func @_im2ht_kernel(%arg0: i32, %arg1: i32, %arg2: memref<1xi32, #tpu.memory_space<smem>>, %arg3: memref<1xi32, #tpu.memory_space<smem>>, %arg4: memref<1xi32, #tpu.memory_space<smem>>, %arg5: memref<1xi32, #tpu.memory_space<smem>>, %arg6: memref<16x256xbf16, #tpu.memory_space<vmem>>, %arg7: memref<1x256x256xbf16, #tpu.memory_space<vmem>>, %arg8: memref<16x256xf32, #tpu.memory_space<vmem>>) attributes {dimension_semantics = [#tpu.dimension_semantics<parallel>, #tpu.dimension_semantics<arbitrary>], iteration_bounds = array<i64: 1, 1>, scalar_prefetch = 4 : i64, scratch_operands = 0 : i64, tpu.core_type = #tpu.core_type<tc>, window_params = [{transform_indices = @transform_0, window_bounds = array<i64: 16, 256>}, {transform_indices = @transform_1, window_bounds = array<i64: 1, 256, 256>}, {transform_indices = @transform_2, window_bounds = array<i64: 16, 256>}]} {
    %0 = arith.index_cast %arg1 : i32 to index
    %1 = memref.load %arg5[%0] : memref<1xi32, #tpu.memory_space<smem>>
    %c1_i32 = arith.constant 1 : i32
    %2 = arith.cmpi sle, %1, %c1_i32 : i32
    %3 = arith.extui %2 : i1 to i32
    %c0_i32 = arith.constant 0 : i32
    %4 = arith.cmpi ne, %3, %c0_i32 : i32
    scf.if %4 {
      %cst = arith.constant 0.000000e+00 : f32
      %8 = vector.broadcast %cst : f32 to vector<16x256xf32>
      %c0 = arith.constant 0 : index
      %c0_2 = arith.constant 0 : index
      %9 = vector.load %arg8[%c0, %c0_2] : memref<16x256xf32, #tpu.memory_space<vmem>>, vector<16x256xf32>
      tpu.vector_store %arg8[%c0, %c0_2], %8 {strides = array<i32>} : memref<16x256xf32, #tpu.memory_space<vmem>>, vector<16x256xf32>,
    } else {
    }
    %c1_i32_0 = arith.constant 1 : i32
    %5 = arith.cmpi sge, %1, %c1_i32_0 : i32
    %6 = arith.extui %5 : i1 to i32
    %c0_i32_1 = arith.constant 0 : i32
    %7 = arith.cmpi ne, %6, %c0_i32_1 : i32
    scf.if %7 {
      %c0 = arith.constant 0 : index
      %c0_2 = arith.constant 0 : index
      %8 = vector.load %arg8[%c0, %c0_2] : memref<16x256xf32, #tpu.memory_space<vmem>>, vector<16x256xf32>
      %c0_3 = arith.constant 0 : index
      %c0_4 = arith.constant 0 : index
      %9 = vector.load %arg6[%c0_3, %c0_4] : memref<16x256xbf16, #tpu.memory_space<vmem>>, vector<16x256xbf16>
      %c0_5 = arith.constant 0 : index
      %c0_6 = arith.constant 0 : index
      %c0_7 = arith.constant 0 : index
      %10 = vector.load %arg7[%c0_5, %c0_6, %c0_7] : memref<1x256x256xbf16, #tpu.memory_space<vmem>>, vector<1x256x256xbf16>
      %11 = vector.shape_cast %10 : vector<1x256x256xbf16> to vector<256x256xbf16>
      %cst = arith.constant dense<0.000000e+00> : vector<16x256xf32>
      %12 = tpu.matmul %9, %11, %cst {dimension_numbers = #tpu.dot_dimension_numbers<[1], [0], [0], [1], [0, 0, 1, 1], [], []>} : vector<16x256xbf16>, vector<256x256xbf16>, vector<16x256xf32> -> vector<16x256xf32>
      %13 = arith.addf %8, %12 : vector<16x256xf32>
      %c0_8 = arith.constant 0 : index
      %c0_9 = arith.constant 0 : index
      %14 = vector.load %arg8[%c0_8, %c0_9] : memref<16x256xf32, #tpu.memory_space<vmem>>, vector<16x256xf32>
      tpu.vector_store %arg8[%c0_8, %c0_9], %13 {strides = array<i32>} : memref<16x256xf32, #tpu.memory_space<vmem>>, vector<16x256xf32>,
    } else {
    }
    return
  }
  func.func @transform_0(%arg0: i32, %arg1: i32, %arg2: memref<1xi32, #tpu.memory_space<smem>>, %arg3: memref<1xi32, #tpu.memory_space<smem>>, %arg4: memref<1xi32, #tpu.memory_space<smem>>, %arg5: memref<1xi32, #tpu.memory_space<smem>>) -> (i32, i32) {
    %0 = arith.index_cast %arg1 : i32 to index
    %1 = memref.load %arg3[%0] : memref<1xi32, #tpu.memory_space<smem>>
    %c0_i32 = arith.constant 0 : i32
    return %arg0, %1 : i32, i32
  }
  func.func @transform_1(%arg0: i32, %arg1: i32, %arg2: memref<1xi32, #tpu.memory_space<smem>>, %arg3: memref<1xi32, #tpu.memory_space<smem>>, %arg4: memref<1xi32, #tpu.memory_space<smem>>, %arg5: memref<1xi32, #tpu.memory_space<smem>>) -> (i32, i32, i32) {
    %0 = arith.index_cast %arg1 : i32 to index
    %1 = memref.load %arg4[%0] : memref<1xi32, #tpu.memory_space<smem>>
    %c0_i32 = arith.constant 0 : i32
    %c0_i32_0 = arith.constant 0 : i32
    %c0_i32_1 = arith.constant 0 : i32
    return %1, %c0_i32, %c0_i32_0 : i32, i32, i32
  }
  func.func @transform_2(%arg0: i32, %arg1: i32, %arg2: memref<1xi32, #tpu.memory_space<smem>>, %arg3: memref<1xi32, #tpu.memory_space<smem>>, %arg4: memref<1xi32, #tpu.memory_space<smem>>, %arg5: memref<1xi32, #tpu.memory_space<smem>>) -> (i32, i32) {
    %0 = arith.index_cast %arg1 : i32 to index
    %1 = memref.load %arg2[%0] : memref<1xi32, #tpu.memory_space<smem>>
    %c0_i32 = arith.constant 0 : i32
    return %arg0, %1 : i32, i32
  }
}

</mosaic_0001>

<bundles_post_ra>
// kernel: im2ht_apply.1
= control target key start
LH: loop header
LB: loop body
LE: loop exit
PB: predicated region body
PF: predicated region fallthrough
CT: control target
= control target key end

     0   :  { %s595_s0 = inlined_call_operand.<no memory space> [shape: s32[1], index: 0, kind: input, shape index: {}, may-alias: {0,1,2}]   ;;  %s596_s1 = inlined_call_operand.<no memory space> [shape: s32[1], index: 1, kind: input, shape index: {}, may-alias: {0,1,2}]   ;;  %s597_s2 = inlined_call_operand.<no memory space> [shape: s32[1], index: 2, kind: input, shape index: {}, may-alias: {0,1,2}]   ;;  %s598_s3 = inlined_call_operand.<no memory space> [shape: s32[1], index: 3, kind: input, shape index: {}]   ;;  %s599_s5 = inlined_call_operand.vmem [shape: bf16[1,256,256], index: 5, kind: input, shape index: {}]   ;;  %s600_s4 = inlined_call_operand.vmem [shape: bf16[16,256], index: 4, kind: input, shape index: {}]   ;;  %s601_s6 = inlined_call_operand.vmem [shape: f32[16,256], index: 6, kind: output, shape index: {}]  }
   0x1   :  { %s385_s23 = sshll.u32 %s596_s1, 1  ;;  %p61_p0 = scmp.lt.s32.totalorder %s597_s2, 0 }
   0x2   :  { %p54_p1 = scmp.lt.s32.totalorder %s385_s23, 1  ;;  %s389_s28 = sshll.u32 %s595_s0, 1 }
   0x3   :  { %s603_s2 = smov (!%p61_p0, %s597_s2), 0  ;;  %p69_p2 = scmp.lt.s32.totalorder %s389_s28, 1 }
   0x4   :  { %s605_s23 = smov (!%p54_p1, %s385_s23), 1  ;;  %s427_s7 = sshll.u32 %s603_s2, 8 }
   0x5   :  { %s386_s8 = sshll.u32 %s605_s23, 2  ;;  %s531_s1 = scalar_lea.vmem %s599_s5, %s427_s7 }
   0x6   :  { %s536_s13 = scalar_lea.vmem %s600_s4, %s386_s8  ;;  %s607_s28 = smov (!%p69_p2, %s389_s28), 1 }
   0x7   :  { %s390_s0 = sshll.u32 %s607_s28, 3  ;;  %p391_p3 = scmp.gt.s32.totalorder %s598_s3, 1 }
   0x8   :  { %s541_s16 = scalar_lea.vmem %s601_s6, %s390_s0  ;;  %v480_v0 = vmov (!%p391_p3), 0.0  }
   0x9   :  { %79 = sbr.rel (%p391_p3) target bundleno = 16 (0x10), region = 13  ;;  %80 = vst [vmem:[%s541_s16] sm:$0xff] (!%p391_p3), %v480_v0  ;;  %81 = vst [vmem:[%s541_s16 + $0x8] sm:$0xff] (!%p391_p3), %v480_v0 }
   0xa   :  { %82 = vst [vmem:[%s541_s16 + $0x10] sm:$0xff] (!%p391_p3), %v480_v0  ;;  %83 = vst [vmem:[%s541_s16 + $0x18] sm:$0xff] (!%p391_p3), %v480_v0 }
  0x10 PF:  { %p392_p4 = scmp.lt.s32.totalorder %s598_s3, 1 }
  0x11   :  { %v429_v1 = vld [vmem:[%s531_s1 + $0x4] ss:$8 sps:$4 sm:$0xff] (!%p392_p4)   ;;  %v431_v2 = vld [vmem:[%s531_s1] ss:$8 sps:$4 sm:$0xff] (!%p392_p4)   ;;  %v432_v3 = vld [vmem:[%s531_s1 + $0x14] ss:$8 sps:$4 sm:$0xff] (!%p392_p4)  }
  0x12   :  { %87 = sbr.rel (%p392_p4) target bundleno = 300 (0x12c), region = 17  ;;  %296 = vmatprep.subr.bf16.mxu0 (!%p392_p4), %v429_v1  ;;  %v434_v4 = vld [vmem:[%s531_s1 + $0x10] ss:$8 sps:$4 sm:$0xff] (!%p392_p4)   ;;  %v435_v5 = vld [vmem:[%s531_s1 + $0x24] ss:$8 sps:$4 sm:$0xff] (!%p392_p4)  }
  0x13   :  { %297 = vmatpush1.bf16.msra.mxu0 (!%p392_p4), %v431_v2  ;;  %v437_v6 = vld [vmem:[%s531_s1 + $0x20] ss:$8 sps:$4 sm:$0xff] (!%p392_p4)   ;;  %v438_v7 = vld [vmem:[%s531_s1 + $0x34] ss:$8 sps:$4 sm:$0xff] (!%p392_p4)   ;;  %v440_v8 = vld [vmem:[%s531_s1 + $0x30] ss:$8 sps:$4 sm:$0xff] (!%p392_p4)  }
  0x14   :  { %298 = vmatprep.subr.bf16.mxu0 (!%p392_p4), %v432_v3  ;;  %v441_v9 = vld [vmem:[%s531_s1 + $0x44] ss:$8 sps:$4 sm:$0xff] (!%p392_p4)   ;;  %v443_v10 = vld [vmem:[%s531_s1 + $0x40] ss:$8 sps:$4 sm:$0xff] (!%p392_p4)   ;;  %v444_v11 = vld [vmem:[%s531_s1 + $0x54] ss:$8 sps:$4 sm:$0xff] (!%p392_p4)  }
  0x15   :  { %v446_v12 = vld [vmem:[%s531_s1 + $0x50] ss:$8 sps:$4 sm:$0xff] (!%p392_p4)   ;;  %v447_v13 = vld [vmem:[%s531_s1 + $0x64] ss:$8 sps:$4 sm:$0xff] (!%p392_p4)   ;;  %v449_v15 = vld [vmem:[%s531_s1 + $0x60] ss:$8 sps:$4 sm:$0xff] (!%p392_p4)  }
  0x16   :  { %v479_v14 = vld [vmem:[%s536_s13 + $0x4] ss:$8 sps:$4 sm:$0xff] (!%p392_p4)   ;;  %v450_v16 = vld [vmem:[%s531_s1 + $0x74] ss:$8 sps:$4 sm:$0xff] (!%p392_p4)   ;;  %v452_v17 = vld [vmem:[%s531_s1 + $0x70] ss:$8 sps:$4 sm:$0xff] (!%p392_p4)  }
  0x17   :  { %299 = vmatpush1.bf16.msra.mxu0 (!%p392_p4), %v434_v4  ;;  %328 = vmatprep.mubr.bf16.mxu0 (!%p392_p4), %v479_v14  ;;  %v453_v18 = vld [vmem:[%s531_s1 + $0x84] ss:$8 sps:$4 sm:$0xff] (!%p392_p4)   ;;  %v455_v19 = vld [vmem:[%s531_s1 + $0x80] ss:$8 sps:$4 sm:$0xff] (!%p392_p4)   ;;  %v456_v20 = vld [vmem:[%s531_s1 + $0x94] ss:$8 sps:$4 sm:$0xff] (!%p392_p4)  }
  0x18   :  { %300 = vmatprep.subr.bf16.mxu0 (!%p392_p4), %v435_v5  ;;  %v458_v21 = vld [vmem:[%s531_s1 + $0x90] ss:$8 sps:$4 sm:$0xff] (!%p392_p4)   ;;  %v459_v22 = vld [vmem:[%s531_s1 + $0xa4] ss:$8 sps:$4 sm:$0xff] (!%p392_p4)   ;;  %v461_v23 = vld [vmem:[%s531_s1 + $0xa0] ss:$8 sps:$4 sm:$0xff] (!%p392_p4)  }
  0x19   :  { %v462_v24 = vld [vmem:[%s531_s1 + $0xb4] ss:$8 sps:$4 sm:$0xff]   ;;  %v464_v25 = vld [vmem:[%s531_s1 + $0xb0] ss:$8 sps:$4 sm:$0xff]   ;;  %v465_v26 = vld [vmem:[%s531_s1 + $0xc4] ss:$8 sps:$4 sm:$0xff]  }
  0x1a   :  { %v467_v27 = vld [vmem:[%s531_s1 + $0xc0] ss:$8 sps:$4 sm:$0xff]   ;;  %v468_v28 = vld [vmem:[%s531_s1 + $0xd4] ss:$8 sps:$4 sm:$0xff]   ;;  %v470_v29 = vld [vmem:[%s531_s1 + $0xd0] ss:$8 sps:$4 sm:$0xff]  }
  0x1b   :  { %301 = vmatpush1.bf16.msra.mxu0 %v437_v6  ;;  %v471_v30 = vld [vmem:[%s531_s1 + $0xe4] ss:$8 sps:$4 sm:$0xff]   ;;  %v473_v31 = vld [vmem:[%s531_s1 + $0xe0] ss:$8 sps:$4 sm:$0xff]   ;;  %v474_v32 = vld [vmem:[%s531_s1 + $0xf4] ss:$8 sps:$4 sm:$0xff]  }
  0x1c   :  { %302 = vmatprep.subr.bf16.mxu0 %v438_v7  ;;  %v476_v33 = vld [vmem:[%s531_s1 + $0xf0] ss:$8 sps:$4 sm:$0xff]   ;;  %v477_v34 = vld [vmem:[%s536_s13] ss:$8 sps:$4 sm:$0xff]  }
  0x1d   :  { %v88_v35 = vld [vmem:[%s541_s16] sm:$0xff]  ;;  %v89_v36 = vld [vmem:[%s541_s16 + $0x8] sm:$0xff]  ;;  %v90_v38 = vld [vmem:[%s541_s16 + $0x10] sm:$0xff] }
  0x1e   :  { %v91_v41 = vld [vmem:[%s541_s16 + $0x18] sm:$0xff] }
  0x1f   :  { %303 = vmatpush1.bf16.msra.mxu0 %v440_v8 }
  0x20   :  { %304 = vmatprep.subr.bf16.mxu0 %v441_v9 }
  0x23   :  { %305 = vmatpush1.bf16.msra.mxu0 %v443_v10 }
  0x24   :  { %306 = vmatprep.subr.bf16.mxu0 %v444_v11 }
  0x27   :  { %307 = vmatpush1.bf16.msra.mxu0 %v446_v12 }
  0x28   :  { %308 = vmatprep.subr.bf16.mxu0 %v447_v13 }
  0x2b   :  { %309 = vmatpush1.bf16.msra.mxu0 %v449_v15 }
  0x2c   :  { %310 = vmatprep.subr.bf16.mxu0 %v450_v16 }
  0x2f   :  { %311 = vmatpush1.bf16.msra.mxu0 %v452_v17 }
  0x30   :  { %312 = vmatprep.subr.bf16.mxu0 %v453_v18 }
  0x33   :  { %313 = vmatpush1.bf16.msra.mxu0 %v455_v19 }
  0x34   :  { %314 = vmatprep.subr.bf16.mxu0 %v456_v20 }
  0x37   :  { %315 = vmatpush1.bf16.msra.mxu0 %v458_v21 }
  0x38   :  { %316 = vmatprep.subr.bf16.mxu0 %v459_v22 }
  0x3b   :  { %317 = vmatpush1.bf16.msra.mxu0 %v461_v23 }
  0x3c   :  { %318 = vmatprep.subr.bf16.mxu0 %v462_v24 }
  0x3f   :  { %319 = vmatpush1.bf16.msra.mxu0 %v464_v25 }
  0x40   :  { %320 = vmatprep.subr.bf16.mxu0 %v465_v26 }
  0x43   :  { %321 = vmatpush1.bf16.msra.mxu0 %v467_v27 }
  0x44   :  { %322 = vmatprep.subr.bf16.mxu0 %v468_v28 }
  0x47   :  { %323 = vmatpush1.bf16.msra.mxu0 %v470_v29 }
  0x48   :  { %324 = vmatprep.subr.bf16.mxu0 %v471_v30 }
  0x4b   :  { %325 = vmatpush1.bf16.msra.mxu0 %v473_v31 }
  0x4c   :  { %326 = vmatprep.subr.bf16.mxu0 %v474_v32 }
  0x4f   :  { %327 = vmatpush1.bf16.msra.mxu0 %v476_v33 }
  0x52   :  { %329 = vmatmul.mubr.bf16.vlgmr.msra.gmra.mrb[0].mxu0 %v477_v34 }
 0x125   :  { %v330_v37 = vpop.f32.mrb[0].mxu0 }
 0x126   :  { %v339_v39 = vadd.f32 %v330_v37, %v88_v35  ;;  %v332_v40 = vpop.f32.mrb[1].mxu0 }
 0x127   :  { %v340_v42 = vadd.f32 %v332_v40, %v89_v36  ;;  %v334_v43 = vpop.f32.mrb[2].mxu0 }
 0x128   :  { %343 = vst [vmem:[%s541_s16] sm:$0xff] %v339_v39  ;;  %v341_v44 = vadd.f32 %v334_v43, %v90_v38  ;;  %v336_v45 = vpop.f32.mrb[3].mxu0 }
 0x129   :  { %344 = vst [vmem:[%s541_s16 + $0x8] sm:$0xff] %v340_v42  ;;  %v342_v46 = vadd.f32 %v336_v45, %v91_v41 }
 0x12a   :  { %345 = vst [vmem:[%s541_s16 + $0x10] sm:$0xff] %v341_v44 }
 0x12b   :  { %346 = vst [vmem:[%s541_s16 + $0x18] sm:$0xff] %v342_v46 }
 0x12c PF:  {}

</bundles_post_ra>
